<compile_context>
chip_gen: v6e
topology: v6e:2x2x1
jax: 0.10.0
libtpu: 0.0.40
codegen_flags: <defaults>
</compile_context>

<pallas_src>
import functools

import jax
import jax.numpy as jnp
from jax import lax
from jax.experimental import pallas as pl
from jax.experimental.pallas import tpu as pltpu

LANE = 128  # lane width: pad all feature dims to a multiple of this


# ----------------------------------------------------------------------------
# Fused Pallas kernel: GATConv -> ReLU -> GATConv -> log_softmax (whole graph)
# ----------------------------------------------------------------------------
def fused_gat_kernel(x_ref, w1_ref, b1_ref, w2_ref, b2_ref, adjb_ref, o_ref,
                     *, f1, f2, mxu_dtype):
    # adj bias: 0.0 for edges (self loops included), -1e30 for non-edges.
    adj_bias = adjb_ref[...].astype(jnp.float32)            # [N, N]

    def gat_layer(x_in, w_ref, b_ref, f_out):
        # Linear transform; the attention vectors ride along as 2 extra cols:
        #   h[:, :f_out]  = x @ w
        #   h[:, f_out]   = <x @ w, a_src>   (per source node)
        #   h[:, f_out+1] = <x @ w, a_dst>   (per destination node)
        h = jnp.dot(x_in.astype(mxu_dtype), w_ref[...],
                    preferred_element_type=jnp.float32)      # [N, 128] f32
        # Source scores must lie along the lane axis of e[dst, src]; one XLU
        # transpose (free slot relative to the VPU/MXU work below).
        ht = jnp.transpose(h)                                # [128, N]
        s_src = ht[f_out:f_out + 1, :]                       # [1, N]
        s_dst = h[:, f_out + 1:f_out + 2]                    # [N, 1]
        e = s_dst + s_src                                    # [N, N]
        e = jnp.where(e > 0.0, e, 0.2 * e) + adj_bias        # LeakyReLU + mask
        m = jnp.max(e, axis=-1, keepdims=True)
        p = jnp.exp(e - m)
        denom = jnp.sum(p, axis=-1, keepdims=True)
        attn = p * pl.reciprocal(denom, approx=True)         # EUP, not VPU div
        # Aggregate (MXU) + bias.  Garbage in the two score columns / padding
        # is harmless: downstream weight rows there are zero and the final
        # log_softmax masks them out.
        return jnp.dot(attn.astype(mxu_dtype), h.astype(mxu_dtype),
                       preferred_element_type=jnp.float32) + b_ref[...]

    h1 = jnp.maximum(gat_layer(x_ref[...], w1_ref, b1_ref, f1), 0.0)  # ReLU
    out = gat_layer(h1, w2_ref, b2_ref, f2)                  # [N, 128]

    # log_softmax over the f2 valid lanes only (padded lanes masked out).
    col = lax.broadcasted_iota(jnp.int32, out.shape, 1)
    valid = col < f2
    masked = jnp.where(valid, out, -1e30)
    mo = jnp.max(masked, axis=-1, keepdims=True)
    lse = mo + jnp.log(jnp.sum(jnp.exp(masked - mo), axis=-1, keepdims=True))
    o_ref[...] = jnp.where(valid, out - lse, 0.0).astype(o_ref.dtype)


# ----------------------------------------------------------------------------
# Wrapper: parameter folding / padding + single pallas_call
# ----------------------------------------------------------------------------
def _make_w_aug(w, a_src, a_dst, rows, lanes):
    """[rows, lanes] = [ zero-row-padded w | w@a_src^T | w@a_dst^T | zeros ]."""
    f_in, f_out = w.shape
    assert f_out + 2 <= lanes and f_in <= rows
    w_pad = jnp.zeros((rows, f_out), jnp.float32).at[:f_in, :].set(w)
    w_aug = jnp.zeros((rows, lanes), jnp.float32)
    w_aug = w_aug.at[:, :f_out].set(w_pad)
    w_aug = w_aug.at[:, f_out].set(w_pad @ a_src[0])
    w_aug = w_aug.at[:, f_out + 1].set(w_pad @ a_dst[0])
    return w_aug


def _pad_lanes(b, lanes):
    return jnp.zeros((1, lanes), jnp.float32).at[:, :b.shape[-1]].set(b)


def gat_forward(x, adj_bias, params, *, hidden, out, mxu_dtype=jnp.float32):
    """Fused 2-layer GAT forward. adj_bias: [N, N] additive mask (0 / -1e30)."""
    n, f_in = x.shape
    w1a = _make_w_aug(params["w1"], params["a_src1"], params["a_dst1"],
                      f_in, LANE)
    w2a = _make_w_aug(params["w2"], params["a_src2"], params["a_dst2"],
                      LANE, LANE)
    b1a = _pad_lanes(params["b1"], LANE)
    b2a = _pad_lanes(params["b2"], LANE)

    vmem = pl.BlockSpec(memory_space=pltpu.MemorySpace.VMEM)
    kernel = functools.partial(fused_gat_kernel, f1=hidden, f2=out,
                               mxu_dtype=mxu_dtype)
    out_pad = pl.pallas_call(
        kernel,
        out_shape=jax.ShapeDtypeStruct((n, LANE), jnp.float32),
        in_specs=[vmem] * 6,
        out_specs=vmem,
    )(x.astype(mxu_dtype), w1a.astype(mxu_dtype), b1a,
      w2a.astype(mxu_dtype), b2a, adj_bias)
    return out_pad[:, :out]


# ----------------------------------------------------------------------------
# Glue: dense adjacency, pure-JAX reference
# ----------------------------------------------------------------------------
def make_dense_adj(edge_index, num_nodes):
    """adj[dst, src] in {0,1} with self loops, plus bf16 additive mask."""
    src, dst = edge_index[0], edge_index[1]
    adj = jnp.zeros((num_nodes, num_nodes), jnp.float32)
    adj = adj.at[dst, src].set(1.0)
    diag = jnp.arange(num_nodes)
    adj = adj.at[diag, diag].set(1.0)
    adj_bias = jnp.where(adj > 0, 0.0, -1e30).astype(jnp.bfloat16)
    return adj, adj_bias


def gat_reference(x, adj, params):
    """Faithful dense f32 GAT math (PyG GATConv semantics, heads=1)."""
    def layer(x, w, a_s, a_d, b):
        h = x @ w
        s_src = jnp.sum(h * a_s, axis=-1)
        s_dst = jnp.sum(h * a_d, axis=-1)
        e = s_dst[:, None] + s_src[None, :]
        e = jnp.where(e > 0, e, 0.2 * e)
        e = jnp.where(adj > 0, e, -1e30)
        attn = jax.nn.softmax(e, axis=-1)
        return attn @ h + b

    h = jax.nn.relu(layer(x, params["w1"], params["a_src1"],
                          params["a_dst1"], params["b1"]))
    out = layer(h, params["w2"], params["a_src2"],
                params["a_dst2"], params["b2"])
    return jax.nn.log_softmax(out, axis=-1)


if __name__ == "__main__":
    key = jax.random.PRNGKey(0)

    num_nodes = 32
    in_channels = 16
    hidden_channels = 32
    out_channels = 8

    k = jax.random.split(key, 12)

    # Node features.
    x = jax.random.normal(k[0], (num_nodes, in_channels), jnp.float32)

    # Deterministic edge_index [2, E]: a ring plus a few random extra edges.
    ring_src = jnp.arange(num_nodes)
    ring_dst = (ring_src + 1) % num_nodes
    extra_src = jax.random.randint(k[1], (num_nodes,), 0, num_nodes)
    extra_dst = jax.random.randint(k[2], (num_nodes,), 0, num_nodes)
    edge_index = jnp.stack([jnp.concatenate([ring_src, extra_src]),
                            jnp.concatenate([ring_dst, extra_dst])])
    adj, adj_bias = make_dense_adj(edge_index, num_nodes)

    # Deterministic glorot-ish init, shapes from GATConv(heads=1).
    def glorot(key, shape):
        fan = shape[0] + shape[-1]
        return jax.random.uniform(key, shape, jnp.float32,
                                  -jnp.sqrt(6.0 / fan), jnp.sqrt(6.0 / fan))

    params = {
        "w1":     glorot(k[3], (in_channels, hidden_channels)),
        "a_src1": glorot(k[4], (1, hidden_channels)),
        "a_dst1": glorot(k[5], (1, hidden_channels)),
        "b1":     jnp.zeros((1, hidden_channels), jnp.float32),
        "w2":     glorot(k[6], (hidden_channels, out_channels)),
        "a_src2": glorot(k[7], (1, out_channels)),
        "a_dst2": glorot(k[8], (1, out_channels)),
        "b2":     jnp.zeros((1, out_channels), jnp.float32),
    }

    ref = jax.block_until_ready(gat_reference(x, adj, params))

    # f32 MXU path: exact module semantics; only deviation from the reference
    # is the EUP approximate reciprocal in the softmax denominator.
    out_f32 = jax.block_until_ready(
        gat_forward(x, adj_bias, params, hidden=hidden_channels,
                    out=out_channels, mxu_dtype=jnp.float32))
    assert out_f32.shape == (num_nodes, out_channels)
    assert jnp.allclose(out_f32, ref, atol=5e-3, rtol=5e-3), (
        f"max abs err = {jnp.max(jnp.abs(out_f32 - ref))}")

    # bf16 MXU path (recommended on v6e/v7x); sanity check with loose bound.
    out_bf16 = jax.block_until_ready(
        gat_forward(x, adj_bias, params, hidden=hidden_channels,
                    out=out_channels, mxu_dtype=jnp.bfloat16))
    assert out_bf16.shape == (num_nodes, out_channels)
    assert bool(jnp.all(jnp.isfinite(out_bf16)))
    assert float(jnp.max(jnp.abs(out_bf16 - ref))) < 0.25

    print("KERNEL_OK")
</pallas_src>

<mosaic_0001>
module attributes {stable_mosaic.version = 11 : i64} {
  func.func @fused_gat_kernel(%arg0: memref<32x16xf32, #tpu.memory_space<vmem>>, %arg1: memref<16x128xf32, #tpu.memory_space<vmem>>, %arg2: memref<1x128xf32, #tpu.memory_space<vmem>>, %arg3: memref<128x128xf32, #tpu.memory_space<vmem>>, %arg4: memref<1x128xf32, #tpu.memory_space<vmem>>, %arg5: memref<32x32xbf16, #tpu.memory_space<vmem>>, %arg6: memref<32x128xf32, #tpu.memory_space<vmem>>) attributes {dimension_semantics = [], scalar_prefetch = 0 : i64, scratch_operands = 0 : i64, tpu.core_type = #tpu.core_type<tc>} {
    %c0 = arith.constant 0 : index
    %c0_0 = arith.constant 0 : index
    %0 = vector.load %arg5[%c0, %c0_0] : memref<32x32xbf16, #tpu.memory_space<vmem>>, vector<32x32xbf16>
    %1 = arith.extf %0 : vector<32x32xbf16> to vector<32x32xf32>
    %c0_1 = arith.constant 0 : index
    %c0_2 = arith.constant 0 : index
    %2 = vector.load %arg0[%c0_1, %c0_2] : memref<32x16xf32, #tpu.memory_space<vmem>>, vector<32x16xf32>
    %c0_3 = arith.constant 0 : index
    %c0_4 = arith.constant 0 : index
    %3 = vector.load %arg1[%c0_3, %c0_4] : memref<16x128xf32, #tpu.memory_space<vmem>>, vector<16x128xf32>
    %cst = arith.constant dense<0.000000e+00> : vector<32x128xf32>
    %4 = tpu.matmul %2, %3, %cst {dimension_numbers = #tpu.dot_dimension_numbers<[1], [0], [0], [1], [0, 0, 1, 1], [], []>} : vector<32x16xf32>, vector<16x128xf32>, vector<32x128xf32> -> vector<32x128xf32>
    %5 = tpu.transpose %4, [1, 0] : vector<32x128xf32> -> vector<128x32xf32>
    %6 = vector.extract_strided_slice %5 {offsets = [32, 0], sizes = [1, 32], strides = [1, 1]} : vector<128x32xf32> to vector<1x32xf32>
    %7 = vector.extract_strided_slice %4 {offsets = [0, 33], sizes = [32, 1], strides = [1, 1]} : vector<32x128xf32> to vector<32x1xf32>
    %8 = vector.broadcast %7 : vector<32x1xf32> to vector<32x32xf32>
    %9 = vector.broadcast %6 : vector<1x32xf32> to vector<32x32xf32>
    %10 = arith.addf %8, %9 : vector<32x32xf32>
    %cst_5 = arith.constant 0.000000e+00 : f32
    %11 = vector.broadcast %cst_5 : f32 to vector<32x32xf32>
    %12 = arith.cmpf ogt, %10, %11 : vector<32x32xf32>
    %cst_6 = arith.constant 2.000000e-01 : f32
    %13 = vector.broadcast %cst_6 : f32 to vector<32x32xf32>
    %14 = arith.mulf %13, %10 : vector<32x32xf32>
    %15 = arith.select %12, %10, %14 : vector<32x32xi1>, vector<32x32xf32>
    %16 = arith.addf %15, %1 : vector<32x32xf32>
    %cst_7 = arith.constant dense<0xFF800000> : vector<32xf32>
    %17 = vector.multi_reduction <maximumf>, %16, %cst_7 [1] : vector<32x32xf32> to vector<32xf32>
    %18 = vector.shape_cast %17 : vector<32xf32> to vector<32x1xf32>
    %19 = vector.broadcast %18 : vector<32x1xf32> to vector<32x32xf32>
    %20 = arith.subf %16, %19 : vector<32x32xf32>
    %21 = math.exp %20 : vector<32x32xf32>
    %cst_8 = arith.constant dense<0.000000e+00> : vector<32xf32>
    %22 = vector.multi_reduction <add>, %21, %cst_8 [1] : vector<32x32xf32> to vector<32xf32>
    %23 = vector.shape_cast %22 : vector<32xf32> to vector<32x1xf32>
    %24 = tpu.reciprocal %23 {approx = true} : vector<32x1xf32> -> vector<32x1xf32>
    %25 = vector.broadcast %24 : vector<32x1xf32> to vector<32x32xf32>
    %26 = arith.mulf %21, %25 : vector<32x32xf32>
    %cst_9 = arith.constant dense<0.000000e+00> : vector<32x128xf32>
    %27 = tpu.matmul %26, %4, %cst_9 {dimension_numbers = #tpu.dot_dimension_numbers<[1], [0], [0], [1], [0, 0, 1, 1], [], []>} : vector<32x32xf32>, vector<32x128xf32>, vector<32x128xf32> -> vector<32x128xf32>
    %c0_10 = arith.constant 0 : index
    %c0_11 = arith.constant 0 : index
    %28 = vector.load %arg2[%c0_10, %c0_11] : memref<1x128xf32, #tpu.memory_space<vmem>>, vector<1x128xf32>
    %29 = vector.broadcast %28 : vector<1x128xf32> to vector<32x128xf32>
    %30 = arith.addf %27, %29 : vector<32x128xf32>
    %cst_12 = arith.constant 0.000000e+00 : f32
    %31 = vector.broadcast %cst_12 : f32 to vector<32x128xf32>
    %32 = arith.maximumf %30, %31 : vector<32x128xf32>
    %c0_13 = arith.constant 0 : index
    %c0_14 = arith.constant 0 : index
    %33 = vector.load %arg3[%c0_13, %c0_14] : memref<128x128xf32, #tpu.memory_space<vmem>>, vector<128x128xf32>
    %cst_15 = arith.constant dense<0.000000e+00> : vector<32x128xf32>
    %34 = tpu.matmul %32, %33, %cst_15 {dimension_numbers = #tpu.dot_dimension_numbers<[1], [0], [0], [1], [0, 0, 1, 1], [], []>} : vector<32x128xf32>, vector<128x128xf32>, vector<32x128xf32> -> vector<32x128xf32>
    %35 = tpu.transpose %34, [1, 0] : vector<32x128xf32> -> vector<128x32xf32>
    %36 = vector.extract_strided_slice %35 {offsets = [8, 0], sizes = [1, 32], strides = [1, 1]} : vector<128x32xf32> to vector<1x32xf32>
    %37 = vector.extract_strided_slice %34 {offsets = [0, 9], sizes = [32, 1], strides = [1, 1]} : vector<32x128xf32> to vector<32x1xf32>
    %38 = vector.broadcast %37 : vector<32x1xf32> to vector<32x32xf32>
    %39 = vector.broadcast %36 : vector<1x32xf32> to vector<32x32xf32>
    %40 = arith.addf %38, %39 : vector<32x32xf32>
    %cst_16 = arith.constant 0.000000e+00 : f32
    %41 = vector.broadcast %cst_16 : f32 to vector<32x32xf32>
    %42 = arith.cmpf ogt, %40, %41 : vector<32x32xf32>
    %cst_17 = arith.constant 2.000000e-01 : f32
    %43 = vector.broadcast %cst_17 : f32 to vector<32x32xf32>
    %44 = arith.mulf %43, %40 : vector<32x32xf32>
    %45 = arith.select %42, %40, %44 : vector<32x32xi1>, vector<32x32xf32>
    %46 = arith.addf %45, %1 : vector<32x32xf32>
    %cst_18 = arith.constant dense<0xFF800000> : vector<32xf32>
    %47 = vector.multi_reduction <maximumf>, %46, %cst_18 [1] : vector<32x32xf32> to vector<32xf32>
    %48 = vector.shape_cast %47 : vector<32xf32> to vector<32x1xf32>
    %49 = vector.broadcast %48 : vector<32x1xf32> to vector<32x32xf32>
    %50 = arith.subf %46, %49 : vector<32x32xf32>
    %51 = math.exp %50 : vector<32x32xf32>
    %cst_19 = arith.constant dense<0.000000e+00> : vector<32xf32>
    %52 = vector.multi_reduction <add>, %51, %cst_19 [1] : vector<32x32xf32> to vector<32xf32>
    %53 = vector.shape_cast %52 : vector<32xf32> to vector<32x1xf32>
    %54 = tpu.reciprocal %53 {approx = true} : vector<32x1xf32> -> vector<32x1xf32>
    %55 = vector.broadcast %54 : vector<32x1xf32> to vector<32x32xf32>
    %56 = arith.mulf %51, %55 : vector<32x32xf32>
    %cst_20 = arith.constant dense<0.000000e+00> : vector<32x128xf32>
    %57 = tpu.matmul %56, %34, %cst_20 {dimension_numbers = #tpu.dot_dimension_numbers<[1], [0], [0], [1], [0, 0, 1, 1], [], []>} : vector<32x32xf32>, vector<32x128xf32>, vector<32x128xf32> -> vector<32x128xf32>
    %c0_21 = arith.constant 0 : index
    %c0_22 = arith.constant 0 : index
    %58 = vector.load %arg4[%c0_21, %c0_22] : memref<1x128xf32, #tpu.memory_space<vmem>>, vector<1x128xf32>
    %59 = vector.broadcast %58 : vector<1x128xf32> to vector<32x128xf32>
    %60 = arith.addf %57, %59 : vector<32x128xf32>
    %61 = tpu.iota {dimensions = array<i32: 1>} : vector<32x128xi32>
    %c8_i32 = arith.constant 8 : i32
    %62 = vector.broadcast %c8_i32 : i32 to vector<32x128xi32>
    %63 = arith.cmpi slt, %61, %62 : vector<32x128xi32>
    %cst_23 = arith.constant -1.000000e+30 : f32
    %64 = vector.broadcast %cst_23 : f32 to vector<32x128xf32>
    %65 = arith.select %63, %60, %64 : vector<32x128xi1>, vector<32x128xf32>
    %cst_24 = arith.constant dense<0xFF800000> : vector<32xf32>
    %66 = vector.multi_reduction <maximumf>, %65, %cst_24 [1] : vector<32x128xf32> to vector<32xf32>
    %67 = vector.shape_cast %66 : vector<32xf32> to vector<32x1xf32>
    %68 = vector.broadcast %67 : vector<32x1xf32> to vector<32x128xf32>
    %69 = arith.subf %65, %68 : vector<32x128xf32>
    %70 = math.exp %69 : vector<32x128xf32>
    %cst_25 = arith.constant dense<0.000000e+00> : vector<32xf32>
    %71 = vector.multi_reduction <add>, %70, %cst_25 [1] : vector<32x128xf32> to vector<32xf32>
    %72 = vector.shape_cast %71 : vector<32xf32> to vector<32x1xf32>
    %73 = math.log %72 : vector<32x1xf32>
    %74 = arith.addf %67, %73 : vector<32x1xf32>
    %75 = vector.broadcast %74 : vector<32x1xf32> to vector<32x128xf32>
    %76 = arith.subf %60, %75 : vector<32x128xf32>
    %cst_26 = arith.constant 0.000000e+00 : f32
    %77 = vector.broadcast %cst_26 : f32 to vector<32x128xf32>
    %78 = arith.select %63, %76, %77 : vector<32x128xi1>, vector<32x128xf32>
    %c0_27 = arith.constant 0 : index
    %c0_28 = arith.constant 0 : index
    %79 = vector.load %arg6[%c0_27, %c0_28] : memref<32x128xf32, #tpu.memory_space<vmem>>, vector<32x128xf32>
    tpu.vector_store %arg6[%c0_27, %c0_28], %78 {strides = array<i32>} : memref<32x128xf32, #tpu.memory_space<vmem>>, vector<32x128xf32>,
    return
  }
}

</mosaic_0001>

<bundles_post_ra>
// kernel: tpu_custom_call.1
= control target key start
LH: loop header
LB: loop body
LE: loop exit
PB: predicated region body
PF: predicated region fallthrough
CT: control target
= control target key end

     0   :  { %11 = vsyncpa [#allocation3], 0  ;;  %s1187_s0 = inlined_call_operand.vmem [shape: f32[32,16], index: 0, kind: input, shape index: {}]   ;;  %s1188_s1 = inlined_call_operand.vmem [shape: f32[16,128], index: 1, kind: input, shape index: {}]   ;;  %s1189_s2 = inlined_call_operand.vmem [shape: f32[1,128], index: 2, kind: input, shape index: {}]   ;;  %s1190_s3 = inlined_call_operand.hbm [shape: f32[128,128], index: 3, kind: input, shape index: {}]   ;;  %s1191_s4 = inlined_call_operand.vmem [shape: f32[1,128], index: 4, kind: input, shape index: {}]   ;;  %s1192_s5 = inlined_call_operand.vmem [shape: bf16[32,32], index: 5, kind: input, shape index: {}]   ;;  %s1193_s6 = inlined_call_operand.hbm [shape: f32[32,128], index: 6, kind: output, shape index: {}]  }
   0x1   :  { %12 = vsyncpa [#allocation4], 0  ;;  %s1024_s21 = smov [#allocation2]  }
   0x2   :  { %s24_s22 = sshll.u32 %s1024_s21, 4  ;;  %s25_s22 = int_to_ptr.vmem [resolvable:$true] %s24_s22 }
   0x3   :  { %s988_s23 = scalar_lea.vmem %s25_s22, 2048  ;;  %p993_p1 = scmp.lt.s32.totalorder %s25_s22, %s25_s22 }
   0x4   :  { %p989_p0 = scmp.ne.s32.totalorder %s25_s22, %s988_s23  ;;  %p994_p2 = scmp.lt.s32.totalorder %s988_s23, %s988_s23 }
   0x6   :  { %p995_p3 = por %p994_p2, %p993_p1 }
   0x8   :  { %p996_p4 = pnand %p995_p3, %p989_p0 }
   0xa   :  { %999 = shalt.err (!%p996_p4)
}
   0xb   :  { %s1025_s24 = smov 128   ;;  %s1026_s25 = smov 8  }
   0xc   :  { %30 = dma.hbm_to_vmem [thread:$0]  %s1190_s3, 2048, %s25_s22, [#allocation3], %s1025_s24, %s1025_s24, %s1026_s25  }
   0xd   :  { %1020 = dma.done.wait [#allocation3], 2048  }
   0xe   :  { %1021 = vsyncadd [#allocation3], 4294965248  ;;  %v1027_v0 = vmov 33   ;;  %vm52_vm0 = vcmask 130048   ;;  %v51_v1 = vld [vmem:[%s1188_s1 + $0x8] sm:$0xff]  ;;  %v50_v2 = vld [vmem:[%s1188_s1] sm:$0xff]  ;;  %v202_v15 = vlaneseq }
   0xf   :  { %928 = vset.pattern.permute.xlu0 %v1027_v0  ;;  %929 = vset.pattern.permute.xlu1 %v1027_v0  ;;  %v46_v3 = vld [vmem:[%s1187_s0] sm:$0xff]  ;;  %v47_v4 = vld [vmem:[%s1187_s0 + $0x8] sm:$0xff]  ;;  %v48_v5 = vld [vmem:[%s1187_s0 + $0x10] sm:$0xff]  ;;  %vm226_vm4 = vcmask 261120  }
  0x10   :  { %845 = vmatprep.subr.mxu1 %v51_v1  ;;  %849 = vmatprep.mubr.msk.f32.mxu1 %vm52_vm0, %v46_v3  ;;  %v49_v6 = vld [vmem:[%s1187_s0 + $0x18] sm:$0xff]  ;;  %v1090_v17 = vshrl.u32 %v202_v15, 7  ;;  %v1098_v23 = vld [vmem:[%s1192_s5 + $0x8] sm:$0xff]   ;;  %v1103_v24 = vld [vmem:[%s1192_s5] sm:$0xff]  }
  0x11   :  { %846 = vmatpush3.msra.mxu1 %v51_v1  ;;  %v801_v30 = vunpack.c.h.bf16 %v1098_v23  ;;  %v797_v31 = vunpack.c.h.bf16 %v1103_v24  ;;  %v796_v34 = vunpack.c.l.bf16 %v1103_v24  ;;  %v800_v45 = vunpack.c.l.bf16 %v1098_v23 }
  0x12   :  { %847 = vmatprep.subr.mxu1 %v50_v2  ;;  %v204_v20 = vsub.s32 0, %v1090_v17 }
  0x13   :  { %848 = vmatpush3.msra.mxu1 %v50_v2 }
  0x14   :  { %850 = vmatmul.mubr.msk.f32.vlgmr.msra.gmra.mxu1 %vm52_vm0, %v47_v4 }
  0x15   :  { %852 = vmatprep.mubr.msk.f32.mxu1 %vm52_vm0, %v48_v5 }
  0x18   :  { %853 = vmatmul.mubr.msk.f32.gmra.mxu1 %vm52_vm0, %v49_v6  ;;  %v394_v6 = vld [vmem:[#allocation2 + $0x78] sm:$0xff] }
  0x19   :  { %869 = vmatprep.subr.mxu0 %v394_v6 }
  0x1a   :  { %870 = vmatpush3.msra.mxu0 %v394_v6 }
  0xd4   :  { %v851_v7 = vpop.f32.mrf.mxu1 }
  0xd5   :  { %189 = vperm.xlu0 %928, %v851_v7  }
  0xd6   :  { %v131_v8 = vpop.f32.mrf.mxu1 }
  0xd8   :  { %v854_v9 = vpop.f32.mrf.mxu1 }
  0xd9   :  { %184 = vperm.xlu0 %928, %v131_v8   ;;  %855 = vmatprep.subr.mxu1 %v854_v9 }
  0xda   :  { %v141_v10 = vpop.f32.mrf.mxu1  ;;  %856 = vmatpush3.msra.mxu1 %v854_v9 }
  0xdb   :  { %857 = vmatprep.subr.mxu1 %v141_v10  ;;  %194 = vperm.xlu1 %929, %v141_v10  }
  0xdc   :  { %858 = vmatpush3.msra.mxu1 %v141_v10 }
  0xdd   :  { %859 = vmatprep.subr.mxu1 %v851_v7 }
  0xde   :  { %860 = vmatpush3.msra.mxu1 %v851_v7 }
  0xdf   :  { %861 = vmatprep.subr.mxu1 %v131_v8  ;;  %199 = vperm.xlu1 %929, %v854_v9  }
  0xe0   :  { %862 = vmatpush3.msra.mxu1 %v131_v8 }
  0xf7   :  { %150 = vxpose.xlu0.b32.start [1/4] (short) (narrow) %v131_v8, 40  ;;  %v392_v8 = vld [vmem:[#allocation2 + $0x68] sm:$0xff] }
  0xfb   :  { %151 = vxpose.xlu0.b32.cont [2/4] (short) (narrow) %v851_v7, 40  ;;  %v393_v7 = vld [vmem:[#allocation2 + $0x70] sm:$0xff] }
  0xfc   :  { %871 = vmatprep.subr.mxu0 %v393_v7 }
  0xfd   :  { %872 = vmatpush3.msra.mxu0 %v393_v7 }
  0xfe   :  { %873 = vmatprep.subr.mxu0 %v392_v8 }
  0xff   :  { %152 = vxpose.xlu0.b32.cont [3/4] (short) (narrow) %v141_v10, 40  ;;  %874 = vmatpush3.msra.mxu0 %v392_v8  ;;  %v390_v10 = vld [vmem:[#allocation2 + $0x58] sm:$0xff] }
 0x103   :  { %153 = vxpose.xlu0.b32.end [4/4] (short) (narrow) %v854_v9, 40  ;;  %v391_v9 = vld [vmem:[#allocation2 + $0x60] sm:$0xff] }
 0x104   :  { %875 = vmatprep.subr.mxu0 %v391_v9 }
 0x105   :  { %876 = vmatpush3.msra.mxu0 %v391_v9 }
 0x106   :  { %877 = vmatprep.subr.mxu0 %v390_v10 }
 0x107   :  { %878 = vmatpush3.msra.mxu0 %v390_v10 }
 0x150   :  { %v190_v11 = vpop.permute.xlu0 %189 }
 0x154   :  { %v185_v12 = vpop.permute.xlu0 %184 }
 0x156   :  { %v195_v18 = vpop.permute.xlu1 %194 }
 0x15a   :  { %v200_v25 = vpop.permute.xlu1 %199 }
 0x173   :  { %v166_v13 = vpop.trf.xlu0 }
 0x174   :  { %v387_v13 = vld [vmem:[#allocation2 + $0x40] sm:$0xff] }
 0x177   :  { %v167_v14 = vpop.trf.xlu0 }
 0x178   :  { %v386_v14 = vld [vmem:[#allocation2 + $0x38] sm:$0xff] }
 0x17b   :  { %v168_v16 = vpop.trf.xlu0 }
 0x17c   :  { %v385_v16 = vld [vmem:[#allocation2 + $0x30] sm:$0xff] }
 0x17f   :  { %v169_v19 = vpop.trf.xlu0 }
 0x180   :  { %v383_v19 = vld [vmem:[#allocation2 + $0x20] sm:$0xff] }
 0x183   :  { %v170_v21 = vpop.trf.xlu0 }
 0x184   :  { %v205_v22 = vrot.slane %v170_v21, %v204_v20 }
 0x186   :  { %v209_v26 = vadd.f32 %v205_v22, %v200_v25  ;;  %v207_v27 = vadd.f32 %v205_v22, %v190_v11  ;;  %v206_v28 = vadd.f32 %v205_v22, %v185_v12  ;;  %v208_v29 = vadd.f32 %v205_v22, %v195_v18  ;;  %v389_v11 = vld [vmem:[#allocation2 + $0x50] sm:$0xff]  ;;  %v388_v12 = vld [vmem:[#allocation2 + $0x48] sm:$0xff] }
 0x187   :  { %879 = vmatprep.subr.mxu0 %v389_v11  ;;  %v384_v18 = vld [vmem:[#allocation2 + $0x28] sm:$0xff] }
 0x188   :  { %vm213_vm1 = vcmp.gt.f32.partialorder %v209_v26, 0.0  ;;  %v217_v32 = vmul.f32 0.2, %v209_v26  ;;  %vm211_vm2 = vcmp.gt.f32.partialorder %v207_v27, 0.0  ;;  %v215_v33 = vmul.f32 0.2, %v207_v27  ;;  %880 = vmatpush3.msra.mxu0 %v389_v11 }
 0x189   :  { %vm210_vm3 = vcmp.gt.f32.partialorder %v206_v28, 0.0  ;;  %v214_v35 = vmul.f32 0.2, %v206_v28  ;;  %v216_v38 = vmul.f32 0.2, %v208_v29  ;;  %vm212_vm5 = vcmp.gt.f32.partialorder %v208_v29, 0.0  ;;  %881 = vmatprep.subr.mxu0 %v388_v12 }
 0x18a   :  { %v221_v36 = vsel %vm213_vm1, %v209_v26, %v217_v32  ;;  %v219_v37 = vsel %vm211_vm2, %v207_v27, %v215_v33  ;;  %882 = vmatpush3.msra.mxu0 %v388_v12 }
 0x18b   :  { %v225_v39 = vadd.f32 %v801_v30, %v221_v36  ;;  %v223_v40 = vadd.f32 %v797_v31, %v219_v37  ;;  %v218_v41 = vsel %vm210_vm3, %v206_v28, %v214_v35  ;;  %v220_v46 = vsel %vm212_vm5, %v208_v29, %v216_v38  ;;  %883 = vmatprep.subr.mxu0 %v387_v13  ;;  %v382_v38 = vld [vmem:[#allocation2 + $0x18] sm:$0xff] }
 0x18c   :  { %v222_v44 = vadd.f32 %v796_v34, %v218_v41  ;;  %v224_v48 = vadd.f32 %v800_v45, %v220_v46  ;;  %884 = vmatpush3.msra.mxu0 %v387_v13  ;;  %v379_v41 = vld [vmem:[#allocation2] sm:$0xff] }
 0x18d   :  { %v236_v42 = vsel %vm226_vm4, %v225_v39, -inf  ;;  %v230_v43 = vsel %vm226_vm4, %v223_v40, -inf  ;;  %885 = vmatprep.subr.mxu0 %v386_v14 }
 0x18e   :  { %237 = vmax.xlane.f32.xlu0 %v236_v42  ;;  %231 = vmax.xlane.f32.xlu1 %v230_v43  ;;  %v227_v47 = vsel %vm226_vm4, %v222_v44, -inf  ;;  %v233_v49 = vsel %vm226_vm4, %v224_v48, -inf  ;;  %v1028_v42 = vmov 9   ;;  %v784_v43 = vld [vmem:[%s1189_s2] ss:$0 sm:$0xff] }
 0x18f   :  { %886 = vmatpush3.msra.mxu0 %v386_v14  ;;  %930 = vset.pattern.permute.xlu1 %v1028_v42 }
 0x190   :  { %887 = vmatprep.subr.mxu0 %v385_v16  ;;  %931 = vset.pattern.permute.xlu0 %v1028_v42 }
 0x191   :  { %888 = vmatpush3.msra.mxu0 %v385_v16 }
 0x192   :  { %228 = vmax.xlane.f32.xlu1 %v227_v47  ;;  %889 = vmatprep.subr.mxu0 %v384_v18 }
 0x193   :  { %890 = vmatpush3.msra.mxu0 %v384_v18 }
 0x194   :  { %891 = vmatprep.subr.mxu0 %v383_v19 }
 0x195   :  { %892 = vmatpush3.msra.mxu0 %v383_v19 }
 0x196   :  { %234 = vmax.xlane.f32.xlu1 %v233_v49  ;;  %893 = vmatprep.subr.mxu0 %v382_v38 }
 0x197   :  { %894 = vmatpush3.msra.mxu0 %v382_v38 }
 0x217   :  { %v232_v50 = vpop.xlane.xlu1 %231  ;;  %v238_v54 = vpop.xlane.xlu0 %237 }
 0x218   :  { %v240_v51 = vsub.f32 %v223_v40, %v232_v50  ;;  %v242_v57 = vsub.f32 %v225_v39, %v238_v54  ;;  %v381_v39 = vld [vmem:[#allocation2 + $0x10] sm:$0xff]  ;;  %v380_v40 = vld [vmem:[#allocation2 + $0x8] sm:$0xff] }
 0x219   :  { %895 = vmatprep.subr.mxu0 %v381_v39 }
 0x21a   :  { %v245_v52 = vmul.f32 1.442695, %v240_v51  ;;  %v249_v61 = vmul.f32 1.442695, %v242_v57  ;;  %896 = vmatpush3.msra.mxu0 %v381_v39 }
 0x21b   :  { %v229_v53 = vpop.xlane.xlu1 %228  ;;  %897 = vmatprep.subr.mxu0 %v380_v40 }
 0x21c   :  { %v239_v55 = vsub.f32 %v222_v44, %v229_v53  ;;  %932 = vpow2.f32 %v245_v52  ;;  %898 = vmatpush3.msra.mxu0 %v380_v40 }
 0x21d   :  { %899 = vmatprep.subr.mxu0 %v379_v41 }
 0x21e   :  { %v243_v56 = vmul.f32 1.442695, %v239_v55  ;;  %900 = vmatpush3.msra.mxu0 %v379_v41 }
 0x21f   :  { %v235_v58 = vpop.xlane.xlu1 %234 }
 0x220   :  { %934 = vpow2.f32 %v243_v56  ;;  %v241_v59 = vsub.f32 %v224_v48, %v235_v58 }
 0x222   :  { %v247_v60 = vmul.f32 1.442695, %v241_v59 }
 0x224   :  { %936 = vpow2.f32 %v247_v60 }
 0x225   :  { %938 = vpow2.f32 %v249_v61 }
 0x229   :  { %v933_v62 = vpop.eup %932 }
 0x22a   :  { %v254_v63 = vsel %vm226_vm4, %v933_v62, 0.0 }
 0x22b   :  { %255 = vadd.xlane.f32.xlu1 %v254_v63 }
 0x22d   :  { %v935_v0 = vpop.eup %934 }
 0x22e   :  { %v251_v1 = vsel %vm226_vm4, %v935_v0, 0.0 }
 0x22f   :  { %252 = vadd.xlane.f32.xlu1 %v251_v1 }
 0x231   :  { %v937_v2 = vpop.eup %936 }
 0x232   :  { %v257_v3 = vsel %vm226_vm4, %v937_v2, 0.0  ;;  %v939_v4 = vpop.eup %938 }
 0x233   :  { %258 = vadd.xlane.f32.xlu1 %v257_v3  ;;  %v260_v5 = vsel %vm226_vm4, %v939_v4, 0.0 }
 0x237   :  { %261 = vadd.xlane.f32.xlu1 %v260_v5 }
 0x2b4   :  { %v256_v21 = vpop.xlane.xlu1 %255 }
 0x2b5   :  { %940 = vrcp.f32 %v256_v21 }
 0x2b8   :  { %v253_v22 = vpop.xlane.xlu1 %252 }
 0x2b9   :  { %942 = vrcp.f32 %v253_v22 }
 0x2bc   :  { %v259_v25 = vpop.xlane.xlu1 %258 }
 0x2bd   :  { %944 = vrcp.f32 %v259_v25 }
 0x2c0   :  { %v262_v26 = vpop.xlane.xlu1 %261 }
 0x2c1   :  { %946 = vrcp.f32 %v262_v26 }
 0x2c2   :  { %v941_v27 = vpop.eup %940 }
 0x2c3   :  { %v268_v32 = vmul.f32 %v941_v27, %v933_v62 }
 0x2c6   :  { %v943_v28 = vpop.eup %942 }
 0x2c7   :  { %v267_v29 = vmul.f32 %v943_v28, %v935_v0 }
 0x2c9   :  { %863 = vmatprep.mubr.msk.f32.mxu1 %vm226_vm4, %v267_v29 }
 0x2ca   :  { %v945_v33 = vpop.eup %944  ;;  %864 = vmatmul.mubr.msk.f32.vlgmr.msra.gmra.mxu1 %vm226_vm4, %v268_v32 }
 0x2cb   :  { %v269_v35 = vmul.f32 %v945_v33, %v937_v2 }
 0x2cd   :  { %866 = vmatprep.mubr.msk.f32.mxu1 %vm226_vm4, %v269_v35 }
 0x2ce   :  { %v947_v36 = vpop.eup %946 }
 0x2cf   :  { %v270_v37 = vmul.f32 %v947_v36, %v939_v4 }
 0x2d1   :  { %867 = vmatmul.mubr.msk.f32.gmra.mxu1 %vm226_vm4, %v270_v37 }
 0x38a   :  { %v865_v44 = vpop.f32.mrf.mxu1 }
 0x38b   :  { %v362_v46 = vadd.f32 %v865_v44, %v784_v43 }
 0x38c   :  { %v356_v47 = vpop.f32.mrf.mxu1 }
 0x38d   :  { %v357_v48 = vadd.f32 %v784_v43, %v356_v47  ;;  %v376_v50 = vmax.f32 %v362_v46, 0.0 }
 0x38f   :  { %v375_v49 = vmax.f32 %v357_v48, 0.0 }
 0x391   :  { %v868_v51 = vpop.f32.mrf.mxu1  ;;  %901 = vmatprep.mubr.f32.mxu0 %v375_v49 }
 0x392   :  { %902 = vmatmul.mubr.f32.vlgmr.msra.gmra.mxu0 %v376_v50  ;;  %v372_v52 = vadd.f32 %v868_v51, %v784_v43 }
 0x393   :  { %v366_v53 = vpop.f32.mrf.mxu1 }
 0x394   :  { %v367_v54 = vadd.f32 %v784_v43, %v366_v53  ;;  %v378_v56 = vmax.f32 %v372_v52, 0.0 }
 0x396   :  { %v377_v55 = vmax.f32 %v367_v54, 0.0 }
 0x398   :  { %904 = vmatprep.mubr.f32.mxu0 %v377_v55 }
 0x399   :  { %905 = vmatmul.mubr.f32.gmra.mxu0 %v378_v56 }
 0x452   :  { %v903_v57 = vpop.f32.mrf.mxu0 }
 0x453   :  { %519 = vperm.xlu1 %930, %v903_v57  }
 0x454   :  { %v461_v58 = vpop.f32.mrf.mxu0 }
 0x457   :  { %514 = vperm.xlu1 %930, %v461_v58  }
 0x459   :  { %v906_v59 = vpop.f32.mrf.mxu0 }
 0x45a   :  { %907 = vmatprep.subr.mxu1 %v906_v59 }
 0x45b   :  { %529 = vperm.xlu1 %930, %v906_v59   ;;  %v471_v60 = vpop.f32.mrf.mxu0  ;;  %908 = vmatpush3.msra.mxu1 %v906_v59 }
 0x45c   :  { %909 = vmatprep.subr.mxu1 %v471_v60 }
 0x45d   :  { %910 = vmatpush3.msra.mxu1 %v471_v60 }
 0x45e   :  { %911 = vmatprep.subr.mxu1 %v903_v57 }
 0x45f   :  { %524 = vperm.xlu1 %930, %v471_v60   ;;  %912 = vmatpush3.msra.mxu1 %v903_v57 }
 0x460   :  { %913 = vmatprep.subr.mxu1 %v461_v58 }
 0x461   :  { %914 = vmatpush3.msra.mxu1 %v461_v58 }
 0x488   :  { %480 = vxpose.xlu1.b32.start [1/4] (short) (narrow) %v461_v58, 16  ;;  %v789_v58 = vld [vmem:[%s1191_s4] ss:$0 sm:$0xff]  ;;  %s1029_s4 = smov [#allocation5]  }
 0x489   :  { %s768_s19 = sshll.u32 %s1029_s4, 4  ;;  %s769_s19 = int_to_ptr.vmem [resolvable:$true] %s768_s19 }
 0x48a   :  { %s1000_s20 = scalar_lea.vmem %s769_s19, 512  ;;  %p1005_p6 = scmp.lt.s32.totalorder %s769_s19, %s769_s19 }
 0x48b   :  { %p1001_p5 = scmp.ne.s32.totalorder %s769_s19, %s1000_s20  ;;  %p1006_p7 = scmp.lt.s32.totalorder %s1000_s20, %s1000_s20 }
 0x48c   :  { %481 = vxpose.xlu1.b32.cont [2/4] (short) (narrow) %v903_v57, 16  ;;  %v1155_v57 = vand.u32 127, %v202_v15 }
 0x48d   :  { %p1007_p8 = por %p1006_p7, %p1005_p6 }
 0x48e   :  { %vm706_vm10 = vcmp.lt.s32.totalorder %v1155_v57, 8 }
 0x48f   :  { %p1008_p9 = pnand %p1007_p8, %p1001_p5 }
 0x490   :  { %482 = vxpose.xlu1.b32.cont [3/4] (short) (narrow) %v471_v60, 16 }
 0x494   :  { %483 = vxpose.xlu1.b32.end [4/4] (short) (narrow) %v906_v59, 16 }
 0x4ce   :  { %v520_v61 = vpop.permute.xlu1 %519 }
 0x4d2   :  { %v515_v62 = vpop.permute.xlu1 %514 }
 0x4d6   :  { %v530_v63 = vpop.permute.xlu1 %529 }
 0x4da   :  { %v525_v0 = vpop.permute.xlu1 %524 }
 0x504   :  { %v496_v1 = vpop.trf.xlu1 }
 0x508   :  { %v497_v2 = vpop.trf.xlu1 }
 0x509   :  { %v535_v3 = vrot.slane %v497_v2, %v204_v20 }
 0x50b   :  { %v537_v4 = vadd.f32 %v535_v3, %v520_v61  ;;  %v536_v5 = vadd.f32 %v535_v3, %v515_v62  ;;  %v538_v6 = vadd.f32 %v535_v3, %v525_v0  ;;  %v539_v12 = vadd.f32 %v535_v3, %v530_v63 }
 0x50d   :  { %vm541_vm6 = vcmp.gt.f32.partialorder %v537_v4, 0.0  ;;  %v545_v7 = vmul.f32 0.2, %v537_v4  ;;  %vm540_vm7 = vcmp.gt.f32.partialorder %v536_v5, 0.0  ;;  %v544_v8 = vmul.f32 0.2, %v536_v5 }
 0x50e   :  { %v546_v11 = vmul.f32 0.2, %v538_v6  ;;  %vm542_vm8 = vcmp.gt.f32.partialorder %v538_v6, 0.0  ;;  %v547_v16 = vmul.f32 0.2, %v539_v12  ;;  %vm543_vm9 = vcmp.gt.f32.partialorder %v539_v12, 0.0 }
 0x50f   :  { %v549_v9 = vsel %vm541_vm6, %v537_v4, %v545_v7  ;;  %v548_v10 = vsel %vm540_vm7, %v536_v5, %v544_v8 }
 0x510   :  { %v553_v13 = vadd.f32 %v797_v31, %v549_v9  ;;  %v552_v17 = vadd.f32 %v796_v34, %v548_v10  ;;  %v550_v20 = vsel %vm542_vm8, %v538_v6, %v546_v11  ;;  %v551_v21 = vsel %vm543_vm9, %v539_v12, %v547_v16 }
 0x511   :  { %v554_v19 = vadd.f32 %v800_v45, %v550_v20  ;;  %v555_v31 = vadd.f32 %v801_v30, %v551_v21 }
 0x512   :  { %v559_v14 = vsel %vm226_vm4, %v553_v13, -inf  ;;  %v556_v18 = vsel %vm226_vm4, %v552_v17, -inf }
 0x513   :  { %560 = vmax.xlane.f32.xlu0 %v559_v14  ;;  %v562_v22 = vsel %vm226_vm4, %v554_v19, -inf  ;;  %v565_v24 = vsel %vm226_vm4, %v555_v31, -inf }
 0x517   :  { %557 = vmax.xlane.f32.xlu0 %v556_v18 }
 0x51b   :  { %563 = vmax.xlane.f32.xlu0 %v562_v22 }
 0x51f   :  { %566 = vmax.xlane.f32.xlu0 %v565_v24 }
 0x59c   :  { %v561_v34 = vpop.xlane.xlu0 %560 }
 0x59d   :  { %v569_v25 = vsub.f32 %v553_v13, %v561_v34 }
 0x59f   :  { %v574_v26 = vmul.f32 1.442695, %v569_v25 }
 0x5a0   :  { %v558_v27 = vpop.xlane.xlu0 %557 }
 0x5a1   :  { %948 = vpow2.f32 %v574_v26  ;;  %v568_v28 = vsub.f32 %v552_v17, %v558_v27 }
 0x5a3   :  { %v572_v29 = vmul.f32 1.442695, %v568_v28 }
 0x5a4   :  { %v564_v32 = vpop.xlane.xlu0 %563 }
 0x5a5   :  { %950 = vpow2.f32 %v572_v29  ;;  %v570_v45 = vsub.f32 %v554_v19, %v564_v32 }
 0x5a7   :  { %v576_v33 = vmul.f32 1.442695, %v570_v45 }
 0x5a8   :  { %v567_v35 = vpop.xlane.xlu0 %566 }
 0x5a9   :  { %952 = vpow2.f32 %v576_v33  ;;  %v571_v36 = vsub.f32 %v555_v31, %v567_v35 }
 0x5ab   :  { %v578_v23 = vmul.f32 1.442695, %v571_v36 }
 0x5ad   :  { %954 = vpow2.f32 %v578_v23 }
 0x5ae   :  { %v949_v30 = vpop.eup %948 }
 0x5af   :  { %v583_v37 = vsel %vm226_vm4, %v949_v30, 0.0 }
 0x5b0   :  { %584 = vadd.xlane.f32.xlu0 %v583_v37 }
 0x5b2   :  { %v951_v38 = vpop.eup %950 }
 0x5b3   :  { %v580_v39 = vsel %vm226_vm4, %v951_v38, 0.0 }
 0x5b4   :  { %581 = vadd.xlane.f32.xlu0 %v580_v39 }
 0x5b6   :  { %v953_v40 = vpop.eup %952 }
 0x5b7   :  { %v586_v41 = vsel %vm226_vm4, %v953_v40, 0.0 }
 0x5b8   :  { %587 = vadd.xlane.f32.xlu0 %v586_v41 }
 0x5ba   :  { %v955_v42 = vpop.eup %954 }
 0x5bb   :  { %v589_v43 = vsel %vm226_vm4, %v955_v42, 0.0 }
 0x5bc   :  { %590 = vadd.xlane.f32.xlu0 %v589_v43 }
 0x639   :  { %v585_v44 = vpop.xlane.xlu0 %584 }
 0x63a   :  { %956 = vrcp.f32 %v585_v44 }
 0x63d   :  { %v582_v46 = vpop.xlane.xlu0 %581 }
 0x63e   :  { %958 = vrcp.f32 %v582_v46 }
 0x641   :  { %v588_v47 = vpop.xlane.xlu0 %587 }
 0x642   :  { %960 = vrcp.f32 %v588_v47 }
 0x645   :  { %v591_v48 = vpop.xlane.xlu0 %590 }
 0x646   :  { %962 = vrcp.f32 %v591_v48 }
 0x647   :  { %v957_v49 = vpop.eup %956 }
 0x648   :  { %v597_v52 = vmul.f32 %v957_v49, %v949_v30 }
 0x64b   :  { %v959_v50 = vpop.eup %958 }
 0x64c   :  { %v596_v51 = vmul.f32 %v959_v50, %v951_v38 }
 0x64e   :  { %915 = vmatprep.mubr.msk.f32.mxu1 %vm226_vm4, %v596_v51 }
 0x64f   :  { %v961_v53 = vpop.eup %960  ;;  %916 = vmatmul.mubr.msk.f32.vlgmr.msra.gmra.mxu1 %vm226_vm4, %v597_v52 }
 0x650   :  { %v598_v54 = vmul.f32 %v961_v53, %v953_v40 }
 0x652   :  { %918 = vmatprep.mubr.msk.f32.mxu1 %vm226_vm4, %v598_v54 }
 0x653   :  { %v963_v55 = vpop.eup %962 }
 0x654   :  { %v599_v56 = vmul.f32 %v963_v55, %v955_v42 }
 0x656   :  { %919 = vmatmul.mubr.msk.f32.gmra.mxu1 %vm226_vm4, %v599_v56 }
 0x70f   :  { %v917_v59 = vpop.f32.mrf.mxu1 }
 0x710   :  { %v691_v60 = vadd.f32 %v917_v59, %v789_v58 }
 0x711   :  { %v685_v61 = vpop.f32.mrf.mxu1 }
 0x712   :  { %v686_v62 = vadd.f32 %v789_v58, %v685_v61  ;;  %v708_v63 = vsel %vm706_vm10, %v691_v60, -1e+30 }
 0x713   :  { %713 = vmax.xlane.f32.xlu0 %v708_v63 }
 0x714   :  { %v707_v1 = vsel %vm706_vm10, %v686_v62, -1e+30 }
 0x716   :  { %v920_v0 = vpop.f32.mrf.mxu1 }
 0x717   :  { %711 = vmax.xlane.f32.xlu0 %v707_v1  ;;  %v1165_v3 = vadd.f32 %v920_v0, %v789_v58 }
 0x718   :  { %v695_v15 = vpop.f32.mrf.mxu1 }
 0x719   :  { %v696_v2 = vadd.f32 %v789_v58, %v695_v15  ;;  %v710_v5 = vsel %vm706_vm10, %v1165_v3, -1e+30 }
 0x71b   :  { %v709_v4 = vsel %vm706_vm10, %v696_v2, -1e+30 }
 0x71c   :  { %715 = vmax.xlane.f32.xlu0 %v709_v4 }
 0x720   :  { %717 = vmax.xlane.f32.xlu0 %v710_v5 }
 0x79c   :  { %v714_v6 = vpop.xlane.xlu0 %713 }
 0x79d   :  { %v720_v7 = vsub.f32 %v708_v63, %v714_v6 }
 0x79f   :  { %v725_v8 = vmul.f32 1.442695, %v720_v7 }
 0x7a0   :  { %v712_v9 = vpop.xlane.xlu0 %711 }
 0x7a1   :  { %964 = vpow2.f32 %v725_v8  ;;  %v719_v10 = vsub.f32 %v707_v1, %v712_v9 }
 0x7a3   :  { %v723_v11 = vmul.f32 1.442695, %v719_v10 }
 0x7a5   :  { %966 = vpow2.f32 %v723_v11  ;;  %v716_v12 = vpop.xlane.xlu0 %715 }
 0x7a6   :  { %v721_v13 = vsub.f32 %v709_v4, %v716_v12 }
 0x7a8   :  { %v727_v14 = vmul.f32 1.442695, %v721_v13 }
 0x7a9   :  { %v718_v17 = vpop.xlane.xlu0 %717 }
 0x7aa   :  { %968 = vpow2.f32 %v727_v14  ;;  %v722_v20 = vsub.f32 %v710_v5, %v718_v17 }
 0x7ac   :  { %v729_v16 = vmul.f32 1.442695, %v722_v20 }
 0x7ae   :  { %v965_v18 = vpop.eup %964  ;;  %970 = vpow2.f32 %v729_v16 }
 0x7af   :  { %733 = vadd.xlane.f32.xlu1 %v965_v18 }
 0x7b2   :  { %v967_v19 = vpop.eup %966 }
 0x7b3   :  { %731 = vadd.xlane.f32.xlu0 %v967_v19 }
 0x7b7   :  { %v969_v21 = vpop.eup %968 }
 0x7b8   :  { %735 = vadd.xlane.f32.xlu0 %v969_v21 }
 0x7bb   :  { %v971_v22 = vpop.eup %970 }
 0x7bc   :  { %737 = vadd.xlane.f32.xlu0 %v971_v22 }
 0x838   :  { %v734_v31 = vpop.xlane.xlu1 %733 }
 0x839   :  { %972 = vlog2.f32 %v734_v31 }
 0x83c   :  { %v732_v24 = vpop.xlane.xlu0 %731 }
 0x83d   :  { %974 = vlog2.f32 %v732_v24 }
 0x841   :  { %v736_v34 = vpop.xlane.xlu0 %735 }
 0x842   :  { %976 = vlog2.f32 %v736_v34 }
 0x845   :  { %v738_v25 = vpop.xlane.xlu0 %737 }
 0x846   :  { %v973_v26 = vpop.eup %972  ;;  %978 = vlog2.f32 %v738_v25 }
 0x847   :  { %v742_v27 = vmul.f32 0.6931472, %v973_v26 }
 0x849   :  { %v748_v28 = vadd.f32 %v742_v27, %v714_v6 }
 0x84a   :  { %v975_v29 = vpop.eup %974 }
 0x84b   :  { %v752_v32 = vsub.f32 %v691_v60, %v748_v28  ;;  %v740_v45 = vmul.f32 0.6931472, %v975_v29 }
 0x84d   :  { %v756_v33 = vsel %vm706_vm10, %v752_v32, 0.0  ;;  %v747_v35 = vadd.f32 %v740_v45, %v712_v9 }
 0x84e   :  { %760 = vst [vmem:[#allocation5 + $0x8] sm:$0xff] %v756_v33 }
 0x84f   :  { %v977_v36 = vpop.eup %976  ;;  %v751_v23 = vsub.f32 %v686_v62, %v747_v35 }
 0x850   :  { %v744_v30 = vmul.f32 0.6931472, %v977_v36 }
 0x851   :  { %v755_v37 = vsel %vm706_vm10, %v751_v23, 0.0 }
 0x852   :  { %v749_v38 = vadd.f32 %v744_v30, %v716_v12  ;;  %759 = vst [vmem:[#allocation5] sm:$0xff] %v755_v37 }
 0x853   :  { %v979_v39 = vpop.eup %978 }
 0x854   :  { %v753_v40 = vsub.f32 %v696_v2, %v749_v38  ;;  %v746_v41 = vmul.f32 0.6931472, %v979_v39 }
 0x856   :  { %v750_v42 = vadd.f32 %v746_v41, %v718_v17  ;;  %v757_v43 = vsel %vm706_vm10, %v753_v40, 0.0 }
 0x857   :  { %761 = vst [vmem:[#allocation5 + $0x10] sm:$0xff] %v757_v43 }
 0x858   :  { %v754_v44 = vsub.f32 %v1165_v3, %v750_v42 }
 0x85a   :  { %v758_v46 = vsel %vm706_vm10, %v754_v44, 0.0 }
 0x85b   :  { %762 = vst [vmem:[#allocation5 + $0x18] sm:$0xff] %v758_v46 }
 0x85c   :  { %1011 = shalt.err (!%p1008_p9)
}
 0x85d   :  { %774 = dma.vmem_to_hbm [thread:$0]  %s769_s19, 512, %s1193_s6, [#allocation4], %s1025_s24, %s1025_s24, %s1026_s25  }
 0x85e   :  { %1022 = dma.done.wait [#allocation4], 512  }
 0x85f   :  { %1023 = vsyncadd [#allocation4], 4294966784 }
 0x860   :  { %778 = vsyncpa [#allocation3], 1 }
 0x861   :  { %779 = vsyncpa [#allocation4], 1 }

</bundles_post_ra>
